<compile_context>
chip_gen: v6e
topology: v6e:2x2x1
jax: 0.10.0
libtpu: 0.0.40
codegen_flags: <defaults>
</compile_context>

<pallas_src>
import types

import jax
import jax.numpy as jnp
from jax.experimental import pallas as pl
from jax.experimental.pallas import tpu as pltpu


# ------------------------------ tiling plan ----------------------------------

# Total budget for the double-buffered hidden-input pipeline
# (n_inputs x 2 buffers x block bytes).
_PIPELINE_BUFFER_BUDGET_BYTES = 8 << 20
# Explicit scoped-VMEM ceiling: above the 16/32 MiB defaults so the blocks and
# f32 temporaries fit, below v7x's 64 MiB physical VMEM (leaves headroom for
# compiler-internal scratch).
_VMEM_LIMIT_BYTES = 48 << 20


def _round_up(x, m):
    return ((x + m - 1) // m) * m


def _plan(B, S, H, itemsize, n_inputs):
    """Pick (tb, ts, th, s_pad): batch/seq/hidden tile sizes + padded seq len."""
    # Batch tile: 8 (sublane granule) whenever it divides B, giving B//8
    # "parallel" grid steps (feeds both v7x TensorCores for B >= 16);
    # otherwise the full batch (full-dim blocks are always legal).
    tb = 8 if B % 8 == 0 else B
    budget = max(_PIPELINE_BUFFER_BUDGET_BYTES // (2 * n_inputs), 64 * 1024)

    # Hidden tile: full H unless even a 128-token slice of it would blow the
    # per-input budget, in which case H gets its own (parallel) grid axis.
    th = H
    if H % 128 == 0:
        while th % 256 == 0 and tb * 128 * th * itemsize > budget:
            th //= 2

    # Sequence tile: small S -> one sublane-aligned block; otherwise a multiple
    # of 128 that divides the (128-padded) sequence and fits the budget.
    if S <= 128:
        s_pad = _round_up(S, 8)
        ts = s_pad
    else:
        s_pad = _round_up(S, 128)
        ts = 128
        while s_pad % (2 * ts) == 0 and tb * (2 * ts) * th * itemsize <= budget:
            ts *= 2
    return tb, ts, th, s_pad


# -------------------------------- kernel -------------------------------------

def _make_masked_avg_kernel(inv_scale):
    """Masked average over the sequence axis of 1 or 2 hidden-state inputs.

    Refs: (mask, h_0[, h_1], out, num_scratch, den_scratch).  Grid axes:
    (batch tile, hidden tile, sequence tile); the sequence axis is the
    innermost reduction, so the output / scratch accumulators are revisited
    across it (init at k == 0, finalize at k == last).
    """

    def kernel(mask_ref, *refs):
        h_refs = refs[:-3]
        o_ref, num_ref, den_ref = refs[-3:]
        k = pl.program_id(2)

        @pl.when(k == 0)
        def _init():
            num_ref[...] = jnp.zeros_like(num_ref)
            den_ref[...] = jnp.zeros_like(den_ref)

        # Sum the hidden inputs in their own dtype; the /n is folded into the
        # finalize (inv_scale) so it is applied once per output element.
        h = h_refs[0][...]                                  # (tb, ts, th)
        for r in h_refs[1:]:
            h = h + r[...]
        m = mask_ref[...]                                   # (tb, ts), 0/1 in hidden dtype
        # Mask multiply in the hidden dtype (exact for a 0/1 mask; bf16 runs at
        # packed VPU rate); a single f32 cast feeds the accumulation.
        num_ref[...] += jnp.sum((h * m[:, :, None]).astype(jnp.float32), axis=1)
        den_ref[...] += jnp.sum(m.astype(jnp.float32), axis=1, keepdims=True)

        @pl.when(k == pl.num_programs(2) - 1)
        def _finalize():
            # NOTE: an all-zero mask row yields inf/nan, matching the PyTorch ref.
            inv = inv_scale * pl.reciprocal(den_ref[...], approx=False)
            o_ref[...] = (num_ref[...] * inv).astype(o_ref.dtype)

    return kernel


# ------------------------------ pallas wrapper --------------------------------

def _masked_avg_pool(attention_mask, hiddens):
    """Mask-weighted mean over sequence of (sum_i hiddens[i]) / len(hiddens)."""
    n = len(hiddens)
    h0 = hiddens[0]
    B, S, H = h0.shape
    dtype = h0.dtype
    tb, ts, th, s_pad = _plan(B, S, H, dtype.itemsize, n)

    mask = attention_mask.astype(dtype)
    if s_pad != S:
        # Zero-pad the sequence axis (mask too) so every block is full-size and
        # pipelined; padded tokens have mask 0 and contribute nothing.
        mask = jnp.pad(mask, ((0, 0), (0, s_pad - S)))
        hiddens = tuple(jnp.pad(h, ((0, 0), (0, s_pad - S), (0, 0)))
                        for h in hiddens)

    grid = (B // tb, H // th, s_pad // ts)
    hidden_spec = pl.BlockSpec((tb, ts, th), lambda i, j, k: (i, k, j))
    kernel = _make_masked_avg_kernel(inv_scale=1.0 / n)

    return pl.pallas_call(
        kernel,
        out_shape=jax.ShapeDtypeStruct((B, H), dtype),
        grid=grid,
        in_specs=[pl.BlockSpec((tb, ts), lambda i, j, k: (i, k))]
                 + [hidden_spec] * n,
        out_specs=pl.BlockSpec((tb, th), lambda i, j, k: (i, j)),
        scratch_shapes=[pltpu.VMEM((tb, th), jnp.float32),   # numerator
                        pltpu.VMEM((tb, 1), jnp.float32)],   # denominator
        compiler_params=pltpu.CompilerParams(
            dimension_semantics=("parallel", "parallel", "arbitrary"),
            vmem_limit_bytes=_VMEM_LIMIT_BYTES),
    )(mask, *hiddens)


class Pooler:
    """Pallas-backed port of simcse.models.Pooler (parameter-free)."""

    def __init__(self, pooler_type):
        assert pooler_type in [
            "cls", "cls_before_pooler", "avg", "avg_top2", "avg_first_last"
        ], "unrecognized pooling type %s" % pooler_type
        self.pooler_type = pooler_type

    def __call__(self, attention_mask, outputs):
        last_hidden = outputs.last_hidden_state
        hidden_states = outputs.hidden_states
        if self.pooler_type in ("cls_before_pooler", "cls"):
            # Per perf review: a plain XLA strided slice moves exactly B*H
            # elements; a Pallas kernel would have to DMA >= 8 tokens per
            # sequence just to keep block shapes legal.
            return last_hidden[:, 0, :]
        elif self.pooler_type == "avg":
            return _masked_avg_pool(attention_mask, (last_hidden,))
        elif self.pooler_type == "avg_first_last":
            return _masked_avg_pool(
                attention_mask, (hidden_states[1], hidden_states[-1]))
        elif self.pooler_type == "avg_top2":
            return _masked_avg_pool(
                attention_mask, (hidden_states[-2], hidden_states[-1]))
        else:
            raise NotImplementedError


# ------------------------------ reference ------------------------------------

def _ref(pooler_type, attention_mask, outputs):
    last_hidden = outputs.last_hidden_state
    m = attention_mask.astype(last_hidden.dtype)
    if pooler_type in ("cls_before_pooler", "cls"):
        return last_hidden[:, 0]
    if pooler_type == "avg":
        h = last_hidden
    elif pooler_type == "avg_first_last":
        h = (outputs.hidden_states[1] + outputs.hidden_states[-1]) / 2.0
    elif pooler_type == "avg_top2":
        h = (outputs.hidden_states[-2] + outputs.hidden_states[-1]) / 2.0
    else:
        raise NotImplementedError
    return (h * m[:, :, None]).sum(1) / m.sum(-1)[:, None]


# -------------------------------- main ---------------------------------------

if __name__ == "__main__":
    def make_outputs(key, B, S, H, n_layers):
        keys = jax.random.split(key, n_layers + 2)
        hidden_states = tuple(
            jax.random.normal(keys[i], (B, S, H), dtype=jnp.float32)
            for i in range(n_layers + 1))
        last_hidden = hidden_states[-1]
        pooler_output = jax.random.normal(keys[-1], (B, H), dtype=jnp.float32)
        return types.SimpleNamespace(
            last_hidden_state=last_hidden,
            pooler_output=pooler_output,
            hidden_states=hidden_states)

    def make_mask(key, B, S):
        lens = jax.random.randint(key, (B,), 1, S + 1)
        return (jnp.arange(S)[None, :] < lens[:, None]).astype(jnp.int32)

    key = jax.random.PRNGKey(0)
    k0, k1, k1m, k2, k2m = jax.random.split(key, 5)

    cases = []
    # Small shapes (module toy config): single block, tb = B.
    outputs_small = make_outputs(k0, 2, 8, 32, n_layers=3)
    mask_small = jnp.array([[1, 1, 1, 1, 1, 1, 0, 0],
                            [1, 1, 1, 1, 0, 0, 0, 0]], dtype=jnp.int32)
    cases.append((mask_small, outputs_small, (2, 32)))
    # Irregular sequence length: exercises zero-padding, multi-step reduction,
    # and multiple "parallel" batch tiles.
    outputs_mid = make_outputs(k1, 16, 333, 512, n_layers=3)
    cases.append((make_mask(k1m, 16, 333), outputs_mid, (16, 512)))
    # Large hidden dim: exercises the hidden-dim tiling (extra grid axis).
    outputs_big = make_outputs(k2, 8, 256, 1536, n_layers=3)
    cases.append((make_mask(k2m, 8, 256), outputs_big, (8, 1536)))

    ok = True
    for mask, outputs, out_shape in cases:
        for ptype in ["cls", "cls_before_pooler", "avg",
                      "avg_first_last", "avg_top2"]:
            pooler = Pooler(ptype)
            got = jax.block_until_ready(pooler(mask, outputs))
            want = _ref(ptype, mask, outputs)
            if got.shape != out_shape:
                ok = False
                print(f"shape mismatch for {ptype} {out_shape}: {got.shape}")
            elif not jnp.allclose(got, want, atol=1e-5, rtol=1e-5):
                ok = False
                err = float(jnp.max(jnp.abs(got - want)))
                print(f"value mismatch for {ptype} {out_shape}: max_err={err}")

    if ok:
        print("KERNEL_OK")
</pallas_src>

<mosaic_0001>
module attributes {stable_mosaic.version = 11 : i64} {
  func.func @kernel(%arg0: i32, %arg1: i32, %arg2: i32, %arg3: memref<2x8xf32, #tpu.memory_space<vmem>>, %arg4: memref<2x8x32xf32, #tpu.memory_space<vmem>>, %arg5: memref<2x32xf32, #tpu.memory_space<vmem>>, %arg6: memref<2x32xf32, #tpu.memory_space<vmem>>, %arg7: memref<2x1xf32, #tpu.memory_space<vmem>>) attributes {dimension_semantics = [#tpu.dimension_semantics<parallel>, #tpu.dimension_semantics<parallel>, #tpu.dimension_semantics<arbitrary>], iteration_bounds = array<i64: 1, 1, 1>, scalar_prefetch = 0 : i64, scratch_operands = 2 : i64, tpu.core_type = #tpu.core_type<tc>, window_params = [{transform_indices = @transform_0, window_bounds = array<i64: 2, 8>}, {transform_indices = @transform_1, window_bounds = array<i64: 2, 8, 32>}, {transform_indices = @transform_2, window_bounds = array<i64: 2, 32>}]} {
    %c0_i32 = arith.constant 0 : i32
    %0 = arith.cmpi eq, %arg2, %c0_i32 : i32
    %1 = arith.extui %0 : i1 to i32
    %c0_i32_0 = arith.constant 0 : i32
    %2 = arith.cmpi ne, %1, %c0_i32_0 : i32
    scf.if %2 {
      %cst_16 = arith.constant 0.000000e+00 : f32
      %20 = vector.broadcast %cst_16 : f32 to vector<2x32xf32>
      %c0_17 = arith.constant 0 : index
      %c0_18 = arith.constant 0 : index
      %21 = vector.load %arg6[%c0_17, %c0_18] : memref<2x32xf32, #tpu.memory_space<vmem>>, vector<2x32xf32>
      tpu.vector_store %arg6[%c0_17, %c0_18], %20 {strides = array<i32>} : memref<2x32xf32, #tpu.memory_space<vmem>>, vector<2x32xf32>,
      %cst_19 = arith.constant 0.000000e+00 : f32
      %22 = vector.broadcast %cst_19 : f32 to vector<2x1xf32>
      %c0_20 = arith.constant 0 : index
      %c0_21 = arith.constant 0 : index
      %23 = vector.load %arg7[%c0_20, %c0_21] : memref<2x1xf32, #tpu.memory_space<vmem>>, vector<2x1xf32>
      tpu.vector_store %arg7[%c0_20, %c0_21], %22 {strides = array<i32>} : memref<2x1xf32, #tpu.memory_space<vmem>>, vector<2x1xf32>,
    } else {
    }
    %c0 = arith.constant 0 : index
    %c0_1 = arith.constant 0 : index
    %c0_2 = arith.constant 0 : index
    %3 = vector.load %arg4[%c0, %c0_1, %c0_2] : memref<2x8x32xf32, #tpu.memory_space<vmem>>, vector<2x8x32xf32>
    %c0_3 = arith.constant 0 : index
    %c0_4 = arith.constant 0 : index
    %4 = vector.load %arg3[%c0_3, %c0_4] : memref<2x8xf32, #tpu.memory_space<vmem>>, vector<2x8xf32>
    %c0_5 = arith.constant 0 : index
    %c0_6 = arith.constant 0 : index
    %5 = vector.load %arg6[%c0_5, %c0_6] : memref<2x32xf32, #tpu.memory_space<vmem>>, vector<2x32xf32>
    %6 = vector.shape_cast %4 : vector<2x8xf32> to vector<2x8x1xf32>
    %7 = vector.broadcast %6 : vector<2x8x1xf32> to vector<2x8x32xf32>
    %8 = arith.mulf %3, %7 : vector<2x8x32xf32>
    %cst = arith.constant dense<0.000000e+00> : vector<2x32xf32>
    %9 = vector.multi_reduction <add>, %8, %cst [1] : vector<2x8x32xf32> to vector<2x32xf32>
    %10 = arith.addf %5, %9 : vector<2x32xf32>
    %c0_7 = arith.constant 0 : index
    %c0_8 = arith.constant 0 : index
    %11 = vector.load %arg6[%c0_7, %c0_8] : memref<2x32xf32, #tpu.memory_space<vmem>>, vector<2x32xf32>
    tpu.vector_store %arg6[%c0_7, %c0_8], %10 {strides = array<i32>} : memref<2x32xf32, #tpu.memory_space<vmem>>, vector<2x32xf32>,
    %c0_9 = arith.constant 0 : index
    %c0_10 = arith.constant 0 : index
    %12 = vector.load %arg7[%c0_9, %c0_10] : memref<2x1xf32, #tpu.memory_space<vmem>>, vector<2x1xf32>
    %cst_11 = arith.constant dense<0.000000e+00> : vector<2xf32>
    %13 = vector.multi_reduction <add>, %4, %cst_11 [1] : vector<2x8xf32> to vector<2xf32>
    %14 = vector.shape_cast %13 : vector<2xf32> to vector<2x1xf32>
    %15 = arith.addf %12, %14 : vector<2x1xf32>
    %c0_12 = arith.constant 0 : index
    %c0_13 = arith.constant 0 : index
    %16 = vector.load %arg7[%c0_12, %c0_13] : memref<2x1xf32, #tpu.memory_space<vmem>>, vector<2x1xf32>
    tpu.vector_store %arg7[%c0_12, %c0_13], %15 {strides = array<i32>} : memref<2x1xf32, #tpu.memory_space<vmem>>, vector<2x1xf32>,
    %c0_i32_14 = arith.constant 0 : i32
    %17 = arith.cmpi eq, %arg2, %c0_i32_14 : i32
    %18 = arith.extui %17 : i1 to i32
    %c0_i32_15 = arith.constant 0 : i32
    %19 = arith.cmpi ne, %18, %c0_i32_15 : i32
    scf.if %19 {
      %c0_16 = arith.constant 0 : index
      %c0_17 = arith.constant 0 : index
      %20 = vector.load %arg7[%c0_16, %c0_17] : memref<2x1xf32, #tpu.memory_space<vmem>>, vector<2x1xf32>
      %21 = tpu.reciprocal %20 : vector<2x1xf32> -> vector<2x1xf32>
      %cst_18 = arith.constant 1.000000e+00 : f32
      %22 = vector.broadcast %cst_18 : f32 to vector<2x1xf32>
      %23 = arith.mulf %22, %21 : vector<2x1xf32>
      %c0_19 = arith.constant 0 : index
      %c0_20 = arith.constant 0 : index
      %24 = vector.load %arg6[%c0_19, %c0_20] : memref<2x32xf32, #tpu.memory_space<vmem>>, vector<2x32xf32>
      %25 = vector.broadcast %23 : vector<2x1xf32> to vector<2x32xf32>
      %26 = arith.mulf %24, %25 : vector<2x32xf32>
      %c0_21 = arith.constant 0 : index
      %c0_22 = arith.constant 0 : index
      %27 = vector.load %arg5[%c0_21, %c0_22] : memref<2x32xf32, #tpu.memory_space<vmem>>, vector<2x32xf32>
      tpu.vector_store %arg5[%c0_21, %c0_22], %26 {strides = array<i32>} : memref<2x32xf32, #tpu.memory_space<vmem>>, vector<2x32xf32>,
    } else {
    }
    return
  }
  func.func @transform_0(%arg0: i32, %arg1: i32, %arg2: i32) -> (i32, i32) {
    %c0_i32 = arith.constant 0 : i32
    return %arg0, %arg2 : i32, i32
  }
  func.func @transform_1(%arg0: i32, %arg1: i32, %arg2: i32) -> (i32, i32, i32) {
    %c0_i32 = arith.constant 0 : i32
    return %arg0, %arg2, %arg1 : i32, i32, i32
  }
  func.func @transform_2(%arg0: i32, %arg1: i32, %arg2: i32) -> (i32, i32) {
    %c0_i32 = arith.constant 0 : i32
    return %arg0, %arg1 : i32, i32
  }
}

</mosaic_0001>

<bundles_post_ra>
// kernel: tpu_custom_call.1
= control target key start
LH: loop header
LB: loop body
LE: loop exit
PB: predicated region body
PF: predicated region fallthrough
CT: control target
= control target key end

     0   :  { %7 = vsyncpa [#allocation5], 0  ;;  %s239_s0 = inlined_call_operand.hbm [shape: f32[2,8], index: 0, kind: input, shape index: {}]   ;;  %s240_s1 = inlined_call_operand.hbm [shape: f32[2,8,32], index: 1, kind: input, shape index: {}]   ;;  %s241_s2 = inlined_call_operand.hbm [shape: f32[2,32], index: 2, kind: output, shape index: {}]  }
   0x1   :  { %8 = vsyncpa [#allocation8], 0 }
   0x2   :  { %9 = vsyncpa [#allocation6], 0  ;;  %s203_s9 = smov [#allocation4]   ;;  %s204_s11 = smov [#allocation7]  }
   0x3   :  { %s16_s10 = sshll.u32 %s203_s9, 4  ;;  %s25_s12 = sshll.u32 %s204_s11, 4  ;;  %s17_s10 = int_to_ptr.vmem [resolvable:$true] %s16_s10  ;;  %s26_s12 = int_to_ptr.vmem [resolvable:$true] %s25_s12 }
   0x4   :  { %s145_s13 = scalar_lea.vmem %s17_s10, 32  ;;  %p150_p1 = scmp.lt.s32.totalorder %s17_s10, %s17_s10 }
   0x5   :  { %p146_p0 = scmp.ne.s32.totalorder %s17_s10, %s145_s13  ;;  %p151_p2 = scmp.lt.s32.totalorder %s145_s13, %s145_s13 }
   0x7   :  { %p152_p3 = por %p151_p2, %p150_p1 }
   0x9   :  { %p153_p4 = pnand %p152_p3, %p146_p0 }
   0xb   :  { %156 = shalt.err (!%p153_p4)
}
   0xc   :  { %19 = dma.hbm_to_vmem [thread:$0]  %s239_s0, 32, %s17_s10, [#allocation5]  }
   0xd   :  { %s165_s16 = scalar_lea.vmem %s26_s12, 256  ;;  %p170_p6 = scmp.lt.s32.totalorder %s26_s12, %s26_s12 }
   0xe   :  { %p166_p5 = scmp.ne.s32.totalorder %s26_s12, %s165_s16  ;;  %p171_p7 = scmp.lt.s32.totalorder %s165_s16, %s165_s16 }
  0x10   :  { %p172_p8 = por %p171_p7, %p170_p6 }
  0x12   :  { %p173_p9 = pnand %p172_p8, %p166_p5 }
  0x14   :  { %176 = shalt.err (!%p173_p9)
}
  0x15   :  { %s205_s17 = smov 128   ;;  %s206_s18 = smov 8  }
  0x16   :  { %31 = dma.hbm_to_vmem [thread:$0]  %s240_s1, 256, %s26_s12, [#allocation8], %s205_s17, %s205_s17, %s206_s18  }
  0x17   :  { %197 = dma.done.wait [#allocation5], 32  }
  0x18   :  { %198 = vsyncadd [#allocation5], 4294967264 }
  0x19   :  { %199 = dma.done.wait [#allocation8], 256  }
  0x1a   :  { %200 = vsyncadd [#allocation8], 4294967040  ;;  %vm44_vm0 = vcmask 1024   ;;  %v207_v0 = vmov 0.0   ;;  %vm90_vm1 = vcmask 58368   ;;  %v50_v3 = vlaneseq  ;;  %v47_v10 = vld [vmem:[#allocation7 + $0x8] sm:$0xff] }
  0x1b   :  { %45 = vst.msk [vmem:[#allocation3] sm:$0x3] %vm44_vm0, %v207_v0  ;;  %v48_v1 = vld [vmem:[#allocation4] sm:$0x3]  ;;  %v208_v7 = vmov 0   ;;  %vm42_vm2 = vcmask 254976  }
  0x1c   :  { %v91_v2 = vsel %vm90_vm1, %v48_v1, 0.0  ;;  %v51_v4 = vshrl.u32 %v50_v3, 7  ;;  %133 = vset.pattern.permute.xlu1 %v208_v7  ;;  %134 = vset.pattern.permute.xlu0 %v208_v7  ;;  %43 = vst.msk [vmem:[#allocation2] sm:$0x3] %vm42_vm2, %v207_v0  ;;  %vm66_vm3 = vcmask 261120   ;;  %v46_v19 = vld [vmem:[#allocation7] sm:$0xff] }
  0x1d   :  { %92 = vadd.xlane.f32.xlu0 %v91_v2  ;;  %vm83_vm4 = vcmask 1041409   ;;  %s209_s0 = smov [#allocation9]  }
  0x1e   :  { %v59_v5 = vsub.s32 1, %v51_v4  ;;  %v52_v8 = vsub.s32 0, %v51_v4  ;;  %s116_s1 = sshll.u32 %s209_s0, 4  ;;  %s117_s1 = int_to_ptr.vmem [resolvable:$true] %s116_s1 }
  0x1f   :  { %s177_s21 = scalar_lea.vmem %s117_s1, 32  ;;  %p182_p11 = scmp.lt.s32.totalorder %s117_s1, %s117_s1 }
  0x20   :  { %v60_v6 = vrot.slane %v48_v1, %v59_v5  ;;  %v53_v9 = vrot.slane %v48_v1, %v52_v8  ;;  %p178_p10 = scmp.ne.s32.totalorder %s117_s1, %s177_s21  ;;  %p183_p12 = scmp.lt.s32.totalorder %s177_s21, %s177_s21 }
  0x22   :  { %62 = vbcast.lane.b32.xlu1 %v60_v6, 256  ;;  %v89_v15 = vld [vmem:[#allocation3] sm:$0x3]  ;;  %p184_p13 = por %p183_p12, %p182_p11 }
  0x23   :  { %v49_v34 = vld [vmem:[#allocation2] sm:$0x3] }
  0x24   :  { %p185_p0 = pnand %p184_p13, %p178_p10 }
  0x33   :  { %55 = vbcast.lane.b32.xlu0 %v53_v9, 256 }
  0x94   :  { %v63_v11 = vpop.permute.xlu1 %62 }
  0x95   :  { %v65_v12 = vmul.f32 %v63_v11, %v47_v10 }
  0x97   :  { %v74_v13 = vsel %vm66_vm3, %v65_v12, 0.0 }
  0x98   :  { %v75_v14 = vrot.slane %v74_v13, 4 }
  0x9a   :  { %v76_v17 = vadd.f32 %v75_v14, %v74_v13 }
  0x9c   :  { %v77_v20 = vrot.slane %v76_v17, 2 }
  0x9e   :  { %v78_v24 = vadd.f32 %v77_v20, %v76_v17 }
  0xa0   :  { %v79_v28 = vrot.slane %v78_v24, 1 }
  0xa2   :  { %v80_v31 = vadd.f32 %v79_v28, %v78_v24 }
  0xa6   :  { %v93_v16 = vpop.xlane.xlu0 %92 }
  0xa7   :  { %v94_v18 = vadd.f32 %v93_v16, %v89_v15 }
  0xa9   :  { %96 = vst.msk [vmem:[#allocation3] sm:$0x3] %vm44_vm0, %v94_v18 }
  0xaa   :  { %v56_v21 = vpop.permute.xlu0 %55 }
  0xab   :  { %v64_v22 = vmul.f32 %v56_v21, %v46_v19 }
  0xad   :  { %v67_v23 = vsel %vm66_vm3, %v64_v22, 0.0 }
  0xae   :  { %v68_v25 = vrot.slane %v67_v23, 4 }
  0xb0   :  { %v100_v26 = vld [vmem:[#allocation3] sm:$0x3]  ;;  %v69_v27 = vadd.f32 %v68_v25, %v67_v23 }
  0xb1   :  { %135 = vrcp.f32 %v100_v26 }
  0xb2   :  { %v70_v29 = vrot.slane %v69_v27, 2 }
  0xb4   :  { %v71_v30 = vadd.f32 %v70_v29, %v69_v27 }
  0xb6   :  { %v72_v32 = vrot.slane %v71_v30, 1 }
  0xb8   :  { %v73_v33 = vadd.f32 %v72_v32, %v71_v30 }
  0xba   :  { %v84_v35 = vsel %vm83_vm4, %v80_v31, %v73_v33 }
  0xbb   :  { %v86_v36 = vadd.f32 %v84_v35, %v49_v34 }
  0xbd   :  { %88 = vst.msk [vmem:[#allocation2] sm:$0x3] %vm42_vm2, %v86_v36 }
  0xbe   :  { %v136_v37 = vpop.eup %135 }
  0xbf   :  { %105 = vperm.xlu1 %133, %v136_v37  }
  0xc4   :  { %v102_v39 = vld [vmem:[#allocation2] sm:$0x3] }
 0x13a   :  { %v106_v38 = vpop.permute.xlu1 %105 }
 0x13b   :  { %v108_v40 = vmul.f32 %v106_v38, %v102_v39 }
 0x13d   :  { %109 = vst.msk [vmem:[#allocation9] sm:$0x3] %vm42_vm2, %v108_v40 }
 0x13e   :  { %188 = shalt.err (!%p185_p0)
}
 0x13f   :  { %119 = dma.vmem_to_hbm [thread:$0]  %s117_s1, 32, %s241_s2, [#allocation6]  }
 0x140   :  { %201 = dma.done.wait [#allocation6], 32  }
 0x141   :  { %202 = vsyncadd [#allocation6], 4294967264 }
 0x142   :  { %123 = vsyncpa [#allocation5], 1 }
 0x143   :  { %124 = vsyncpa [#allocation8], 1 }
 0x144   :  { %125 = vsyncpa [#allocation6], 1 }

</bundles_post_ra>
